<compile_context>
chip_gen: v7x
topology: tpu7x:2x2x1
jax: 0.10.0
libtpu: 0.0.40
codegen_flags: <defaults>
</compile_context>

<pallas_src>
import functools

import jax
import jax.numpy as jnp
import numpy as np
from jax.experimental import pallas as pl
from jax.experimental.pallas import tpu as pltpu


def _round_up(n, m):
    return ((n + m - 1) // m) * m


# ----------------------------------------------------------------------------
# Kernel
# ----------------------------------------------------------------------------
def _stanh_kernel(bb_ref, hw_ref, beta_ref, x_ref, o_ref, *, num_terms):
    """One lane-dense tile of NonSymStanH (beta=None path).

    bb_ref  : SMEM (L,)  beta * sort(b)      (scalar prefetch)
    hw_ref  : SMEM (L,)  w / 2               (scalar prefetch)
    beta_ref: SMEM (1,)  beta                (scalar prefetch)
    x_ref   : VMEM (block_rows, cols) input tile
    o_ref   : VMEM (block_rows, cols) output tile

    jnp.tanh lowers to a single EUP push per element per term on TPU, so at
    L >= ~4 the EUP slot (v6e/v7x) or HBM (v5e) is the binding resource and
    the ~3 VALU ops/term are free filler.  (If a bundle dump ever shows tanh
    expanding to exp+recip, switch to the shared-exponential form
    w_i/(1 + c_i*exp(-2*beta*x)) - w_i/2 with c_i = exp(2*beta*b_i) folded
    host-side: 1 + L EUP pushes instead of 2L.)
    """
    bx = x_ref[...].astype(jnp.float32) * beta_ref[0]   # hoist beta*x once/tile
    acc = hw_ref[0] * jnp.tanh(bx - bb_ref[0])
    for i in range(1, num_terms):                        # L is tiny: unroll
        acc = acc + hw_ref[i] * jnp.tanh(bx - bb_ref[i])
    o_ref[...] = acc.astype(o_ref.dtype)


# ----------------------------------------------------------------------------
# pallas_call wrapper over a lane-dense 2D slab
# ----------------------------------------------------------------------------
def _stanh_pallas_2d(x2, bb, hw, beta_arr, *, target_block_bytes=2 << 20):
    rows, cols = x2.shape
    L = int(bb.shape[0])
    itemsize = jnp.dtype(x2.dtype).itemsize

    # Block sizing:
    #  * cap block at ~target_block_bytes
    #  * split rows (nearly) evenly across blocks (bounded partial-block waste)
    #  * force >= 2 grid steps when rows >= 16 (v7x 2-TensorCore sharding)
    max_block_rows = max(8, (target_block_bytes // (cols * itemsize)) // 8 * 8)
    min_blocks = 2 if rows >= 16 else 1
    n_blocks = max(pl.cdiv(rows, max_block_rows), min_blocks)
    block_rows = min(_round_up(pl.cdiv(rows, n_blocks), 8), rows)
    grid = (pl.cdiv(rows, block_rows),)

    kernel = functools.partial(_stanh_kernel, num_terms=L)

    # CostEstimate reflects actual (partial-block-inclusive) traffic.
    covered = grid[0] * block_rows * cols
    cost = pl.CostEstimate(
        flops=3 * L * covered,
        transcendentals=L * covered,
        bytes_accessed=2 * itemsize * covered,
    )

    return pl.pallas_call(
        kernel,
        out_shape=jax.ShapeDtypeStruct((rows, cols), x2.dtype),
        grid_spec=pltpu.PrefetchScalarGridSpec(
            num_scalar_prefetch=3,            # bb, hw, beta -> SMEM
            grid=grid,
            in_specs=[
                pl.BlockSpec((block_rows, cols),
                             lambda r, bb_s, hw_s, be_s: (r, 0)),
            ],
            out_specs=pl.BlockSpec((block_rows, cols),
                                   lambda r, bb_s, hw_s, be_s: (r, 0)),
        ),
        compiler_params=pltpu.CompilerParams(
            dimension_semantics=("parallel",),
            vmem_limit_bytes=32 * 1024 * 1024,
        ),
        cost_estimate=cost,
    )(bb, hw, beta_arr, x2)


# ----------------------------------------------------------------------------
# Public wrapper
# ----------------------------------------------------------------------------
def _pick_cols(n):
    for c in (1024, 512, 256, 128):
        if n % c == 0:
            return c
    return 0


def non_sym_stanh_forward(x, b, w, beta):
    """x: (B, 1, M) float input, b/w: (L,) parameters, beta: python scalar.

    Returns (B, 1, M), matching NonSymStanH.forward(x) (beta=None path).
    """
    assert x.ndim == 3 and x.shape[1] == 1, \
        "NonSymStanH broadcasting implies layout (B, 1, M)"
    B, _, M = x.shape
    N = B * M

    # Host-side parameter folding (tiny: L elements; b/w are trainable so
    # they stay runtime inputs, scalar-prefetched into SMEM).
    b_sorted = jnp.sort(b.astype(jnp.float32))
    bb = jnp.float32(beta) * b_sorted            # beta * b_i
    hw = 0.5 * w.astype(jnp.float32)             # w_i / 2
    beta_arr = jnp.asarray([beta], dtype=jnp.float32)

    xf = x.reshape(N)                            # contiguous reshape: free

    cols = _pick_cols(N)
    if cols:
        # Entire array through the kernel; non-divisible row remainder is
        # handled by Pallas' masked partial last block (no pad / slice copies).
        y2 = _stanh_pallas_2d(xf.reshape(N // cols, cols), bb, hw, beta_arr)
        return y2.reshape(B, 1, M)

    # Fallback: N not a multiple of 128.  Kernel on the 128-divisible prefix,
    # the tiny (<128-element) tail in plain jnp — avoids a full-array pad.
    n_main = (N // 128) * 128
    parts = []
    if n_main:
        c_main = _pick_cols(n_main)
        y_main = _stanh_pallas_2d(xf[:n_main].reshape(n_main // c_main, c_main),
                                  bb, hw, beta_arr)
        parts.append(y_main.reshape(n_main))
    x_tail = xf[n_main:].astype(jnp.float32)
    z = jnp.float32(beta) * x_tail[None, :] - bb[:, None]
    y_tail = jnp.sum(hw[:, None] * jnp.tanh(z), axis=0).astype(x.dtype)
    parts.append(y_tail)
    return jnp.concatenate(parts).reshape(B, 1, M)


# ----------------------------------------------------------------------------
# Deterministic parameter construction mirroring NonSymStanH.__init__
# ----------------------------------------------------------------------------
def build_params(beta, num_sigmoids, extrema=5):
    minimo, massimo = -extrema, extrema
    range_num = np.arange(minimo + 0.5, massimo, dtype=np.float32)  # 2*extrema
    if num_sigmoids > 0:
        jump = len(range_num) / num_sigmoids
        c = len(range_num) / num_sigmoids
        b = np.arange(minimo + jump / 2, massimo + jump / 2, c, dtype=np.float32)
        w = np.zeros(num_sigmoids, dtype=np.float32) + jump
    else:
        b = range_num.copy()
        w = np.ones(len(range_num), dtype=np.float32)
    return jnp.asarray(b), jnp.asarray(w)


# Pure-JAX reference (directly mirrors the torch forward, beta=None path)
def reference_forward(x, b, w, beta):
    bs = jnp.sort(b)
    z = beta * (x - bs[:, None])                       # (B, L, M)
    f = 2.0 * jax.nn.sigmoid(2.0 * z) - 1.0
    return jnp.sum(w[:, None] / 2.0 * f, axis=1)[:, None, :]


# TODO(synk): forward(x, beta=-1) hard-sign branch (non-default path) is not
# implemented; only the default beta=None smooth-staircase path is covered.

if __name__ == "__main__":
    beta = 1.0
    num_sigmoids = 4
    extrema = 5
    b, w = build_params(beta, num_sigmoids, extrema)

    key = jax.random.PRNGKey(0)

    # Small shape consistent with the module's (B, 1, M) broadcasting.
    B, M = 2, 256
    x = jax.random.normal(key, (B, 1, M), dtype=jnp.float32) * 3.0
    y = jax.block_until_ready(non_sym_stanh_forward(x, b, w, beta))
    y_ref = reference_forward(x, b, w, beta)
    assert y.shape == (B, 1, M)
    np.testing.assert_allclose(np.asarray(y), np.asarray(y_ref),
                               rtol=1e-5, atol=1e-5)

    # Shape that exercises the partial (masked) last row-block path.
    B1, M1 = 3, 1408   # N = 4224 = 33 * 128 -> rows=33, 2 grid steps, last partial
    x1 = jax.random.normal(jax.random.PRNGKey(0), (B1, 1, M1),
                           dtype=jnp.float32) * 3.0
    y1 = jax.block_until_ready(non_sym_stanh_forward(x1, b, w, beta))
    y1_ref = reference_forward(x1, b, w, beta)
    np.testing.assert_allclose(np.asarray(y1), np.asarray(y1_ref),
                               rtol=1e-5, atol=1e-5)

    # Non-128-divisible shape exercises the prefix + jnp-tail fallback path.
    B2, M2 = 3, 200
    x2 = jax.random.normal(jax.random.PRNGKey(0), (B2, 1, M2),
                           dtype=jnp.float32) * 3.0
    y2 = jax.block_until_ready(non_sym_stanh_forward(x2, b, w, beta))
    y2_ref = reference_forward(x2, b, w, beta)
    np.testing.assert_allclose(np.asarray(y2), np.asarray(y2_ref),
                               rtol=1e-5, atol=1e-5)

    print("KERNEL_OK")
</pallas_src>

<mosaic_0001>
module attributes {stable_mosaic.version = 11 : i64} {
  func.func @_stanh_kernel(%arg0: i32, %arg1: memref<4xf32, #tpu.memory_space<smem>>, %arg2: memref<4xf32, #tpu.memory_space<smem>>, %arg3: memref<1xf32, #tpu.memory_space<smem>>, %arg4: memref<1x512xf32, #tpu.memory_space<vmem>>, %arg5: memref<1x512xf32, #tpu.memory_space<vmem>>) attributes {dimension_semantics = [#tpu.dimension_semantics<parallel>], iteration_bounds = array<i64: 1>, scalar_prefetch = 3 : i64, scratch_operands = 0 : i64, tpu.core_type = #tpu.core_type<tc>, window_params = [{transform_indices = @transform_0, window_bounds = array<i64: 1, 512>}, {transform_indices = @transform_1, window_bounds = array<i64: 1, 512>}]} {
    %c0 = arith.constant 0 : index
    %c0_0 = arith.constant 0 : index
    %0 = vector.load %arg4[%c0, %c0_0] : memref<1x512xf32, #tpu.memory_space<vmem>>, vector<1x512xf32>
    %c0_1 = arith.constant 0 : index
    %1 = memref.load %arg3[%c0_1] : memref<1xf32, #tpu.memory_space<smem>>
    %2 = vector.broadcast %1 : f32 to vector<1x512xf32>
    %3 = arith.mulf %0, %2 : vector<1x512xf32>
    %c0_2 = arith.constant 0 : index
    %4 = memref.load %arg2[%c0_2] : memref<4xf32, #tpu.memory_space<smem>>
    %c0_3 = arith.constant 0 : index
    %5 = memref.load %arg1[%c0_3] : memref<4xf32, #tpu.memory_space<smem>>
    %6 = vector.broadcast %5 : f32 to vector<1x512xf32>
    %7 = arith.subf %3, %6 : vector<1x512xf32>
    %8 = math.tanh %7 : vector<1x512xf32>
    %9 = vector.broadcast %4 : f32 to vector<1x512xf32>
    %10 = arith.mulf %9, %8 : vector<1x512xf32>
    %c1 = arith.constant 1 : index
    %11 = memref.load %arg2[%c1] : memref<4xf32, #tpu.memory_space<smem>>
    %c1_4 = arith.constant 1 : index
    %12 = memref.load %arg1[%c1_4] : memref<4xf32, #tpu.memory_space<smem>>
    %13 = vector.broadcast %12 : f32 to vector<1x512xf32>
    %14 = arith.subf %3, %13 : vector<1x512xf32>
    %15 = math.tanh %14 : vector<1x512xf32>
    %16 = vector.broadcast %11 : f32 to vector<1x512xf32>
    %17 = arith.mulf %16, %15 : vector<1x512xf32>
    %18 = arith.addf %10, %17 : vector<1x512xf32>
    %c2 = arith.constant 2 : index
    %19 = memref.load %arg2[%c2] : memref<4xf32, #tpu.memory_space<smem>>
    %c2_5 = arith.constant 2 : index
    %20 = memref.load %arg1[%c2_5] : memref<4xf32, #tpu.memory_space<smem>>
    %21 = vector.broadcast %20 : f32 to vector<1x512xf32>
    %22 = arith.subf %3, %21 : vector<1x512xf32>
    %23 = math.tanh %22 : vector<1x512xf32>
    %24 = vector.broadcast %19 : f32 to vector<1x512xf32>
    %25 = arith.mulf %24, %23 : vector<1x512xf32>
    %26 = arith.addf %18, %25 : vector<1x512xf32>
    %c3 = arith.constant 3 : index
    %27 = memref.load %arg2[%c3] : memref<4xf32, #tpu.memory_space<smem>>
    %c3_6 = arith.constant 3 : index
    %28 = memref.load %arg1[%c3_6] : memref<4xf32, #tpu.memory_space<smem>>
    %29 = vector.broadcast %28 : f32 to vector<1x512xf32>
    %30 = arith.subf %3, %29 : vector<1x512xf32>
    %31 = math.tanh %30 : vector<1x512xf32>
    %32 = vector.broadcast %27 : f32 to vector<1x512xf32>
    %33 = arith.mulf %32, %31 : vector<1x512xf32>
    %34 = arith.addf %26, %33 : vector<1x512xf32>
    %c0_7 = arith.constant 0 : index
    %c0_8 = arith.constant 0 : index
    %35 = vector.load %arg5[%c0_7, %c0_8] : memref<1x512xf32, #tpu.memory_space<vmem>>, vector<1x512xf32>
    tpu.vector_store %arg5[%c0_7, %c0_8], %34 {strides = array<i32>} : memref<1x512xf32, #tpu.memory_space<vmem>>, vector<1x512xf32>,
    return
  }
  func.func @transform_0(%arg0: i32, %arg1: memref<4xf32, #tpu.memory_space<smem>>, %arg2: memref<4xf32, #tpu.memory_space<smem>>, %arg3: memref<1xf32, #tpu.memory_space<smem>>) -> (i32, i32) {
    %c0_i32 = arith.constant 0 : i32
    %c0_i32_0 = arith.constant 0 : i32
    return %arg0, %c0_i32 : i32, i32
  }
  func.func @transform_1(%arg0: i32, %arg1: memref<4xf32, #tpu.memory_space<smem>>, %arg2: memref<4xf32, #tpu.memory_space<smem>>, %arg3: memref<1xf32, #tpu.memory_space<smem>>) -> (i32, i32) {
    %c0_i32 = arith.constant 0 : i32
    %c0_i32_0 = arith.constant 0 : i32
    return %arg0, %c0_i32 : i32, i32
  }
}

</mosaic_0001>

<bundles_post_ra>
// kernel: tpu_custom_call.1
= control target key start
LH: loop header
LB: loop body
LE: loop exit
PB: predicated region body
PF: predicated region fallthrough
CT: control target
= control target key end

     0   :  { %s196_s0 = inlined_call_operand.vmem [shape: f32[4], index: 0, kind: input, shape index: {}]   ;;  %s197_s2 = inlined_call_operand.<no memory space> [shape: f32[1], index: 2, kind: input, shape index: {}]   ;;  %s198_s3 = inlined_call_operand.vmem [shape: f32[1,512], index: 3, kind: input, shape index: {}]   ;;  %s199_s4 = inlined_call_operand.hbm [shape: f32[1,512], index: 4, kind: output, shape index: {}]   ;;  %s200_s1 = inlined_call_operand.vmem [shape: f32[4], index: 1, kind: input, shape index: {}]  }
   0x1   :  { %s9_s17 = sshll.u32 %s196_s0, 4  ;;  %s13_s20 = sshll.u32 %s200_s1, 4  ;;  %s10_s17 = int_to_ptr.vmem [resolvable:$true] %s9_s17  ;;  %s14_s20 = int_to_ptr.vmem [resolvable:$true] %s13_s20 }
   0x2   :  { %s94_s21 = scalar_lea.vmem %s10_s17, 16  ;;  %p99_p1 = scmp.lt.s32.totalorder %s10_s17, %s10_s17 }
   0x3   :  { %p95_p0 = scmp.ne.s32.totalorder %s10_s17, %s94_s21  ;;  %p100_p2 = scmp.lt.s32.totalorder %s94_s21, %s94_s21 }
   0x5   :  { %p101_p3 = por %p100_p2, %p99_p1 }
   0x7   :  { %p102_p4 = pnand %p101_p3, %p95_p0 }
   0x9   :  { %105 = shalt.err (!%p102_p4)  }
   0xa   :  { %s144_s22 = smov [#allocation3]   ;;  %s106_s23 = scalar_lea.vmem %s14_s20, 16 }
   0xb   :  { %12 = dma.vmem_to_smem %s10_s17, 16, %s144_s22, [#allocation2] }
   0xc   :  { %p107_p5 = scmp.ne.s32.totalorder %s14_s20, %s106_s23  ;;  %p111_p6 = scmp.lt.s32.totalorder %s14_s20, %s14_s20 }
   0xd   :  { %p112_p7 = scmp.lt.s32.totalorder %s106_s23, %s106_s23 }
   0xf   :  { %p113_p8 = por %p112_p7, %p111_p6 }
  0x11   :  { %p114_p9 = pnand %p113_p8, %p107_p5 }
  0x13   :  { %117 = shalt.err (!%p114_p9)  }
  0x14   :  { %s145_s0 = smov [#allocation4]  }
  0x15   :  { %16 = dma.vmem_to_smem %s14_s20, 16, %s145_s0, [#allocation2] }
  0x16   :  { %140 = dma.done.wait [#allocation2], 32 }
  0x17   :  { %141 = vsyncadd [#allocation2], 4294967264 }
  0x18   :  { %19 = sfence }
  0x19   :  { %v23_v0 = vld [vmem:[%s198_s3] sm:$0xf]  ;;  %v25_v1 = vstv %s197_s2  ;;  %s28_s27 = sld [smem:[#allocation3]]  ;;  %s78_s28 = sld [smem:[#allocation3 + $0x1]] }
  0x1a   :  { %20 = vsyncpa [#allocation7], 0  ;;  %s80_s29 = sld [smem:[#allocation3 + $0x2]]  ;;  %v26_v2 = vmul.f32 %v25_v1, %v23_v0  ;;  %s82_s30 = sld [smem:[#allocation3 + $0x3]]  ;;  %v58_v22 = vlaneseq }
  0x1b   :  { %s27_s5 = sld [smem:[#allocation4]]  ;;  %s77_s3 = sld [smem:[#allocation4 + $0x1]] }
  0x1c   :  { %s79_s6 = sld [smem:[#allocation4 + $0x2]]  ;;  %s81_s2 = sld [smem:[#allocation4 + $0x3]]  ;;  %vm60_vm0 = vcmp.lt.s32.totalorder %v58_v22, 512 }
  0x1d   :  { %s146_s7 = smov [#allocation6]  }
  0x1e   :  { %s69_s8 = sshll.u32 %s146_s7, 4  ;;  %s70_s8 = int_to_ptr.vmem [resolvable:$true] %s69_s8 }
  0x1f   :  { %v29_v3 = vstv %s28_s27  ;;  %v36_v5 = vstv %s78_s28  ;;  %s118_s9 = scalar_lea.vmem %s70_s8, 64  ;;  %p123_p11 = scmp.lt.s32.totalorder %s70_s8, %s70_s8 }
  0x20   :  { %v30_v4 = vsub.f32 %v26_v2, %v29_v3  ;;  %v37_v6 = vsub.f32 %v26_v2, %v36_v5  ;;  %v44_v7 = vstv %s80_s29  ;;  %v52_v9 = vstv %s82_s30  ;;  %p119_p10 = scmp.ne.s32.totalorder %s70_s8, %s118_s9  ;;  %p124_p12 = scmp.lt.s32.totalorder %s118_s9, %s118_s9 }
  0x21   :  { %v45_v8 = vsub.f32 %v26_v2, %v44_v7  ;;  %v53_v10 = vsub.f32 %v26_v2, %v52_v9  ;;  %v32_v11 = vstv %s27_s5  ;;  %v39_v12 = vstv %s77_s3 }
  0x22   :  { %86 = vtanh.f32 %v30_v4  ;;  %v47_v14 = vstv %s79_s6  ;;  %v55_v17 = vstv %s81_s2  ;;  %p125_p13 = por %p124_p12, %p123_p11 }
  0x23   :  { %88 = vtanh.f32 %v37_v6 }
  0x24   :  { %90 = vtanh.f32 %v45_v8  ;;  %p126_p0 = pnand %p125_p13, %p119_p10 }
  0x25   :  { %92 = vtanh.f32 %v53_v10 }
  0x2c   :  { %v87_v13 = vpop.eup %86 }
  0x2d   :  { %v89_v15 = vpop.eup %88  ;;  %v33_v16 = vmul.f32 %v87_v13, %v32_v11 }
  0x2e   :  { %v91_v18 = vpop.eup %90  ;;  %v40_v19 = vmul.f32 %v89_v15, %v39_v12 }
  0x2f   :  { %v93_v20 = vpop.eup %92  ;;  %v48_v21 = vmul.f32 %v91_v18, %v47_v14 }
  0x30   :  { %v41_v23 = vadd.f32 %v40_v19, %v33_v16  ;;  %v56_v24 = vmul.f32 %v93_v20, %v55_v17 }
  0x32   :  { %v49_v25 = vadd.f32 %v48_v21, %v41_v23 }
  0x34   :  { %v57_v26 = vadd.f32 %v56_v24, %v49_v25 }
  0x36   :  { %62 = vst.msk [vmem:[#allocation6] sm:$0xf] %vm60_vm0, %v57_v26 }
  0x37   :  { %129 = shalt.err (!%p126_p0)
}
  0x38   :  { %s130_s12 = scalar_lea.hbm %s199_s4, 64 }
  0x39   :  { %p131_p1 = scmp.ne.s32.totalorder %s199_s4, %s130_s12  ;;  %p134_p2 = scmp.lt.u32.totalorder %s130_s12, %s199_s4 }
  0x3b   :  { %p136_p3 = pnand %p134_p2, %p131_p1 }
  0x3d   :  { %139 = shalt.err (!%p136_p3)
}
  0x3e   :  { %72 = dma.vmem_to_hbm [thread:$0]  %s70_s8, 64, %s199_s4, [#allocation7]  }
  0x3f   :  { %142 = dma.done.wait [#allocation7], 64  }
  0x40   :  { %143 = vsyncadd [#allocation7], 4294967232 }
  0x41   :  { %76 = vsyncpa [#allocation7], 1 }

</bundles_post_ra>
